<compile_context>
chip_gen: v5e
topology: v5e:2x2
jax: 0.10.0
libtpu: 0.0.40
codegen_flags: <defaults>
</compile_context>

<pallas_src>
import jax
import jax.numpy as jnp
from jax.experimental import pallas as pl
from jax.experimental.pallas import tpu as pltpu


def _round_up(n, m):
    return ((n + m - 1) // m) * m


def _mish(x):
    # Mish(x) = x * tanh(softplus(x)) = x * t(t+2) / (t(t+2) + 2), t = exp(x).
    # One EUP exp + approx reciprocal (EUP) + one Newton step (VPU) instead of
    # exp + log + tanh.  Clamp keeps t*(t+2) well inside f32 range.  Kept in
    # f32 (v5e VPU/EUP have no bf16).
    t = jnp.exp(jnp.minimum(x, 20.0))
    num = t * (t + 2.0)
    den = num + 2.0
    r = pl.reciprocal(den, approx=True)
    r = r * (2.0 - den * r)          # Newton refinement -> ~f32 accuracy, VPU only
    return x * num * r


def _make_kernel(n_layers):
    """Fused MLP kernel: n_layers x (Linear + Mish) on one batch tile."""

    def kernel(*refs):
        x_ref = refs[0]
        o_ref = refs[-1]
        h = x_ref[...]                       # bf16 input tile
        for l in range(n_layers):            # static unroll
            w_ref = refs[1 + 2 * l]
            b_ref = refs[2 + 2 * l]
            acc = jnp.dot(h.astype(jnp.bfloat16), w_ref[...],
                          preferred_element_type=jnp.float32)
            h = _mish(acc + b_ref[...])       # bias + Mish in f32
        o_ref[...] = h.astype(o_ref.dtype)

    return kernel


def _prepare_params(params, pack):
    """Return (W, b) list used by the kernel.

    pack == 2: W -> blockdiag(W, W) (2*din, 2*dout), b -> [b, b] (1, 2*dout),
    so one vreg row carries two batch rows.  No lane padding is applied to
    the final layer (lane-dense-enough masked store beats padded traffic).
    """
    if pack == 1:
        return [(W, b) for (W, b) in params]
    prepped = []
    for (W, b) in params:
        Z = jnp.zeros_like(W)
        W2 = jnp.concatenate(
            [jnp.concatenate([W, Z], axis=1),
             jnp.concatenate([Z, W], axis=1)], axis=0)
        b2 = jnp.concatenate([b, b], axis=1)
        prepped.append((W2, b2))
    return prepped


def deepset_forward(x, params, *, batch_tile=2048):
    """x: (B, input_size) f32.  params: list of (W, b), W (in, out), b (1, out)."""
    B, in_dim = x.shape
    hidden = params[0][0].shape[1]
    emb = params[-1][0].shape[1]
    n_layers = len(params)

    # Pack two batch rows per 128-lane vreg row when hidden fits in half a
    # vreg (the common DeepSet configuration exercised here).
    pack = 2 if (B % 2 == 0 and B >= 16 and hidden <= 64 and emb <= 64) else 1

    prepped = _prepare_params(params, pack)
    xk = x.reshape(B // pack, pack * in_dim) if pack == 2 else x
    Bk = xk.shape[0]
    out_w = prepped[-1][0].shape[1]

    # bf16 matmul operands (MXU native path, half the DMA bytes); biases f32.
    xk = xk.astype(jnp.bfloat16)
    weights = [(W.astype(jnp.bfloat16), b.astype(jnp.float32)) for W, b in prepped]

    # Batch tile: large (amortize ~0.35us/step), but always >= 2 grid steps
    # when possible so both v7x TensorCores get work; sublane (8) aligned.
    bt = min(batch_tile, Bk)
    if Bk >= 16:
        bt = min(bt, _round_up(pl.cdiv(Bk, 2), 8))
    bt = max(8, (bt // 8) * 8)
    bt = min(bt, Bk)
    grid = (pl.cdiv(Bk, bt),)

    # Advisory cost estimate (true, un-padded math; reciprocal not counted).
    flops = 2 * B * sum(int(W.shape[0]) * int(W.shape[1]) for W, _ in params)
    transcendentals = B * sum(int(W.shape[1]) for W, _ in params)
    bytes_accessed = (int(xk.size) * 2 + B * emb * 4
                      + sum(int(W.size) * 2 + int(b.size) * 4 for W, b in weights))

    in_specs = [pl.BlockSpec((bt, xk.shape[1]), lambda i: (i, 0))]
    flat_args = [xk]
    for W, b in weights:
        # Constant index_map: whole weight/bias stays resident in VMEM and is
        # not re-fetched across grid steps.
        in_specs.append(pl.BlockSpec(W.shape, lambda i: (0, 0)))
        in_specs.append(pl.BlockSpec(b.shape, lambda i: (0, 0)))
        flat_args.extend([W, b])

    out = pl.pallas_call(
        _make_kernel(n_layers),
        out_shape=jax.ShapeDtypeStruct((Bk, out_w), x.dtype),
        grid_spec=pltpu.PrefetchScalarGridSpec(
            num_scalar_prefetch=0,
            grid=grid,
            in_specs=in_specs,
            out_specs=pl.BlockSpec((bt, out_w), lambda i: (i, 0)),
        ),
        compiler_params=pltpu.CompilerParams(
            dimension_semantics=("parallel",),
            vmem_limit_bytes=32 * 1024 * 1024),
        cost_estimate=pl.CostEstimate(
            flops=flops,
            transcendentals=transcendentals,
            bytes_accessed=bytes_accessed),
    )(*flat_args)

    if pack == 2:
        out = out.reshape(B, emb)   # (Bk, 2*emb) -> (B, emb), rows 2i, 2i+1
    return out


def init_params(key, input_size, emb_size, hidden_size, n_hidden_layers=3):
    """Same layer shapes as the PyTorch module (W stored as (in, out))."""
    dims = list(zip([input_size] + [hidden_size] * n_hidden_layers,
                    [hidden_size] * n_hidden_layers + [emb_size]))
    params = []
    for (din, dout) in dims:
        key, kw, kb = jax.random.split(key, 3)
        scale = 1.0 / jnp.sqrt(jnp.float32(din))
        W = jax.random.uniform(kw, (din, dout), jnp.float32, -scale, scale)
        b = jax.random.uniform(kb, (1, dout), jnp.float32, -scale, scale)
        params.append((W, b))
    return params


def reference_forward(x, params):
    h = x
    for (W, b) in params:
        h = h @ W + b
        h = h * jnp.tanh(jnp.logaddexp(h, 0.0))  # exact Mish
    return h


if __name__ == "__main__":
    key = jax.random.PRNGKey(0)

    batch = 256          # packed rows = 128, bt = 64 -> grid of 2 (even, v7x)
    input_size = 32
    hidden_size = 64
    emb_size = 16

    key, kx = jax.random.split(key)
    x = jax.random.normal(kx, (batch, input_size), jnp.float32)

    params = init_params(key, input_size, emb_size, hidden_size,
                         n_hidden_layers=3)

    out = deepset_forward(x, params)
    out = jax.block_until_ready(out)

    ref = reference_forward(x, params)
    assert out.shape == (batch, emb_size)
    # bf16 matmul operands with f32 accumulation -> relaxed tolerance.
    assert jnp.allclose(out, ref, atol=3e-2, rtol=3e-2), "mismatch vs reference"

    print("KERNEL_OK")
</pallas_src>

<mosaic_0001>
module attributes {stable_mosaic.version = 11 : i64} {
  func.func @kernel(%arg0: i32, %arg1: memref<64x64xbf16, #tpu.memory_space<vmem>>, %arg2: memref<64x128xbf16, #tpu.memory_space<vmem>>, %arg3: memref<1x128xf32, #tpu.memory_space<vmem>>, %arg4: memref<128x128xbf16, #tpu.memory_space<vmem>>, %arg5: memref<1x128xf32, #tpu.memory_space<vmem>>, %arg6: memref<128x128xbf16, #tpu.memory_space<vmem>>, %arg7: memref<1x128xf32, #tpu.memory_space<vmem>>, %arg8: memref<128x32xbf16, #tpu.memory_space<vmem>>, %arg9: memref<1x32xf32, #tpu.memory_space<vmem>>, %arg10: memref<64x32xf32, #tpu.memory_space<vmem>>) attributes {dimension_semantics = [#tpu.dimension_semantics<parallel>], iteration_bounds = array<i64: 2>, scalar_prefetch = 0 : i64, scratch_operands = 0 : i64, tpu.core_type = #tpu.core_type<tc>, window_params = [{transform_indices = @transform_0, window_bounds = array<i64: 64, 64>}, {pipeline_mode = #tpu.pipeline_mode<synchronous>, transform_indices = @transform_1, window_bounds = array<i64: 64, 128>}, {pipeline_mode = #tpu.pipeline_mode<synchronous>, transform_indices = @transform_2, window_bounds = array<i64: 1, 128>}, {pipeline_mode = #tpu.pipeline_mode<synchronous>, transform_indices = @transform_3, window_bounds = array<i64: 128, 128>}, {pipeline_mode = #tpu.pipeline_mode<synchronous>, transform_indices = @transform_4, window_bounds = array<i64: 1, 128>}, {pipeline_mode = #tpu.pipeline_mode<synchronous>, transform_indices = @transform_5, window_bounds = array<i64: 128, 128>}, {pipeline_mode = #tpu.pipeline_mode<synchronous>, transform_indices = @transform_6, window_bounds = array<i64: 1, 128>}, {pipeline_mode = #tpu.pipeline_mode<synchronous>, transform_indices = @transform_7, window_bounds = array<i64: 128, 32>}, {pipeline_mode = #tpu.pipeline_mode<synchronous>, transform_indices = @transform_8, window_bounds = array<i64: 1, 32>}, {transform_indices = @transform_9, window_bounds = array<i64: 64, 32>}]} {
    %c0 = arith.constant 0 : index
    %c0_0 = arith.constant 0 : index
    %0 = vector.load %arg1[%c0, %c0_0] : memref<64x64xbf16, #tpu.memory_space<vmem>>, vector<64x64xbf16>
    %c0_1 = arith.constant 0 : index
    %c0_2 = arith.constant 0 : index
    %1 = vector.load %arg2[%c0_1, %c0_2] : memref<64x128xbf16, #tpu.memory_space<vmem>>, vector<64x128xbf16>
    %cst = arith.constant dense<0.000000e+00> : vector<64x128xf32>
    %2 = tpu.matmul %0, %1, %cst {dimension_numbers = #tpu.dot_dimension_numbers<[1], [0], [0], [1], [0, 0, 1, 1], [], []>} : vector<64x64xbf16>, vector<64x128xbf16>, vector<64x128xf32> -> vector<64x128xf32>
    %c0_3 = arith.constant 0 : index
    %c0_4 = arith.constant 0 : index
    %3 = vector.load %arg3[%c0_3, %c0_4] : memref<1x128xf32, #tpu.memory_space<vmem>>, vector<1x128xf32>
    %4 = vector.broadcast %3 : vector<1x128xf32> to vector<64x128xf32>
    %5 = arith.addf %2, %4 : vector<64x128xf32>
    %cst_5 = arith.constant 2.000000e+01 : f32
    %6 = vector.broadcast %cst_5 : f32 to vector<64x128xf32>
    %7 = arith.minimumf %5, %6 : vector<64x128xf32>
    %8 = math.exp %7 : vector<64x128xf32>
    %cst_6 = arith.constant 2.000000e+00 : f32
    %9 = vector.broadcast %cst_6 : f32 to vector<64x128xf32>
    %10 = arith.addf %8, %9 : vector<64x128xf32>
    %11 = arith.mulf %8, %10 : vector<64x128xf32>
    %cst_7 = arith.constant 2.000000e+00 : f32
    %12 = vector.broadcast %cst_7 : f32 to vector<64x128xf32>
    %13 = arith.addf %11, %12 : vector<64x128xf32>
    %14 = tpu.reciprocal %13 {approx = true} : vector<64x128xf32> -> vector<64x128xf32>
    %15 = arith.mulf %13, %14 : vector<64x128xf32>
    %cst_8 = arith.constant 2.000000e+00 : f32
    %16 = vector.broadcast %cst_8 : f32 to vector<64x128xf32>
    %17 = arith.subf %16, %15 : vector<64x128xf32>
    %18 = arith.mulf %14, %17 : vector<64x128xf32>
    %19 = arith.mulf %5, %11 : vector<64x128xf32>
    %20 = arith.mulf %19, %18 : vector<64x128xf32>
    %21 = arith.truncf %20 : vector<64x128xf32> to vector<64x128xbf16>
    %c0_9 = arith.constant 0 : index
    %c0_10 = arith.constant 0 : index
    %22 = vector.load %arg4[%c0_9, %c0_10] : memref<128x128xbf16, #tpu.memory_space<vmem>>, vector<128x128xbf16>
    %cst_11 = arith.constant dense<0.000000e+00> : vector<64x128xf32>
    %23 = tpu.matmul %21, %22, %cst_11 {dimension_numbers = #tpu.dot_dimension_numbers<[1], [0], [0], [1], [0, 0, 1, 1], [], []>} : vector<64x128xbf16>, vector<128x128xbf16>, vector<64x128xf32> -> vector<64x128xf32>
    %c0_12 = arith.constant 0 : index
    %c0_13 = arith.constant 0 : index
    %24 = vector.load %arg5[%c0_12, %c0_13] : memref<1x128xf32, #tpu.memory_space<vmem>>, vector<1x128xf32>
    %25 = vector.broadcast %24 : vector<1x128xf32> to vector<64x128xf32>
    %26 = arith.addf %23, %25 : vector<64x128xf32>
    %cst_14 = arith.constant 2.000000e+01 : f32
    %27 = vector.broadcast %cst_14 : f32 to vector<64x128xf32>
    %28 = arith.minimumf %26, %27 : vector<64x128xf32>
    %29 = math.exp %28 : vector<64x128xf32>
    %cst_15 = arith.constant 2.000000e+00 : f32
    %30 = vector.broadcast %cst_15 : f32 to vector<64x128xf32>
    %31 = arith.addf %29, %30 : vector<64x128xf32>
    %32 = arith.mulf %29, %31 : vector<64x128xf32>
    %cst_16 = arith.constant 2.000000e+00 : f32
    %33 = vector.broadcast %cst_16 : f32 to vector<64x128xf32>
    %34 = arith.addf %32, %33 : vector<64x128xf32>
    %35 = tpu.reciprocal %34 {approx = true} : vector<64x128xf32> -> vector<64x128xf32>
    %36 = arith.mulf %34, %35 : vector<64x128xf32>
    %cst_17 = arith.constant 2.000000e+00 : f32
    %37 = vector.broadcast %cst_17 : f32 to vector<64x128xf32>
    %38 = arith.subf %37, %36 : vector<64x128xf32>
    %39 = arith.mulf %35, %38 : vector<64x128xf32>
    %40 = arith.mulf %26, %32 : vector<64x128xf32>
    %41 = arith.mulf %40, %39 : vector<64x128xf32>
    %42 = arith.truncf %41 : vector<64x128xf32> to vector<64x128xbf16>
    %c0_18 = arith.constant 0 : index
    %c0_19 = arith.constant 0 : index
    %43 = vector.load %arg6[%c0_18, %c0_19] : memref<128x128xbf16, #tpu.memory_space<vmem>>, vector<128x128xbf16>
    %cst_20 = arith.constant dense<0.000000e+00> : vector<64x128xf32>
    %44 = tpu.matmul %42, %43, %cst_20 {dimension_numbers = #tpu.dot_dimension_numbers<[1], [0], [0], [1], [0, 0, 1, 1], [], []>} : vector<64x128xbf16>, vector<128x128xbf16>, vector<64x128xf32> -> vector<64x128xf32>
    %c0_21 = arith.constant 0 : index
    %c0_22 = arith.constant 0 : index
    %45 = vector.load %arg7[%c0_21, %c0_22] : memref<1x128xf32, #tpu.memory_space<vmem>>, vector<1x128xf32>
    %46 = vector.broadcast %45 : vector<1x128xf32> to vector<64x128xf32>
    %47 = arith.addf %44, %46 : vector<64x128xf32>
    %cst_23 = arith.constant 2.000000e+01 : f32
    %48 = vector.broadcast %cst_23 : f32 to vector<64x128xf32>
    %49 = arith.minimumf %47, %48 : vector<64x128xf32>
    %50 = math.exp %49 : vector<64x128xf32>
    %cst_24 = arith.constant 2.000000e+00 : f32
    %51 = vector.broadcast %cst_24 : f32 to vector<64x128xf32>
    %52 = arith.addf %50, %51 : vector<64x128xf32>
    %53 = arith.mulf %50, %52 : vector<64x128xf32>
    %cst_25 = arith.constant 2.000000e+00 : f32
    %54 = vector.broadcast %cst_25 : f32 to vector<64x128xf32>
    %55 = arith.addf %53, %54 : vector<64x128xf32>
    %56 = tpu.reciprocal %55 {approx = true} : vector<64x128xf32> -> vector<64x128xf32>
    %57 = arith.mulf %55, %56 : vector<64x128xf32>
    %cst_26 = arith.constant 2.000000e+00 : f32
    %58 = vector.broadcast %cst_26 : f32 to vector<64x128xf32>
    %59 = arith.subf %58, %57 : vector<64x128xf32>
    %60 = arith.mulf %56, %59 : vector<64x128xf32>
    %61 = arith.mulf %47, %53 : vector<64x128xf32>
    %62 = arith.mulf %61, %60 : vector<64x128xf32>
    %63 = arith.truncf %62 : vector<64x128xf32> to vector<64x128xbf16>
    %c0_27 = arith.constant 0 : index
    %c0_28 = arith.constant 0 : index
    %64 = vector.load %arg8[%c0_27, %c0_28] : memref<128x32xbf16, #tpu.memory_space<vmem>>, vector<128x32xbf16>
    %cst_29 = arith.constant dense<0.000000e+00> : vector<64x32xf32>
    %65 = tpu.matmul %63, %64, %cst_29 {dimension_numbers = #tpu.dot_dimension_numbers<[1], [0], [0], [1], [0, 0, 1, 1], [], []>} : vector<64x128xbf16>, vector<128x32xbf16>, vector<64x32xf32> -> vector<64x32xf32>
    %c0_30 = arith.constant 0 : index
    %c0_31 = arith.constant 0 : index
    %66 = vector.load %arg9[%c0_30, %c0_31] : memref<1x32xf32, #tpu.memory_space<vmem>>, vector<1x32xf32>
    %67 = vector.broadcast %66 : vector<1x32xf32> to vector<64x32xf32>
    %68 = arith.addf %65, %67 : vector<64x32xf32>
    %cst_32 = arith.constant 2.000000e+01 : f32
    %69 = vector.broadcast %cst_32 : f32 to vector<64x32xf32>
    %70 = arith.minimumf %68, %69 : vector<64x32xf32>
    %71 = math.exp %70 : vector<64x32xf32>
    %cst_33 = arith.constant 2.000000e+00 : f32
    %72 = vector.broadcast %cst_33 : f32 to vector<64x32xf32>
    %73 = arith.addf %71, %72 : vector<64x32xf32>
    %74 = arith.mulf %71, %73 : vector<64x32xf32>
    %cst_34 = arith.constant 2.000000e+00 : f32
    %75 = vector.broadcast %cst_34 : f32 to vector<64x32xf32>
    %76 = arith.addf %74, %75 : vector<64x32xf32>
    %77 = tpu.reciprocal %76 {approx = true} : vector<64x32xf32> -> vector<64x32xf32>
    %78 = arith.mulf %76, %77 : vector<64x32xf32>
    %cst_35 = arith.constant 2.000000e+00 : f32
    %79 = vector.broadcast %cst_35 : f32 to vector<64x32xf32>
    %80 = arith.subf %79, %78 : vector<64x32xf32>
    %81 = arith.mulf %77, %80 : vector<64x32xf32>
    %82 = arith.mulf %68, %74 : vector<64x32xf32>
    %83 = arith.mulf %82, %81 : vector<64x32xf32>
    %c0_36 = arith.constant 0 : index
    %c0_37 = arith.constant 0 : index
    %84 = vector.load %arg10[%c0_36, %c0_37] : memref<64x32xf32, #tpu.memory_space<vmem>>, vector<64x32xf32>
    tpu.vector_store %arg10[%c0_36, %c0_37], %83 {strides = array<i32>} : memref<64x32xf32, #tpu.memory_space<vmem>>, vector<64x32xf32>,
    return
  }
  func.func @transform_0(%arg0: i32) -> (i32, i32) {
    %c0_i32 = arith.constant 0 : i32
    %c0_i32_0 = arith.constant 0 : i32
    return %arg0, %c0_i32 : i32, i32
  }
  func.func @transform_1(%arg0: i32) -> (i32, i32) {
    %c0_i32 = arith.constant 0 : i32
    %c0_i32_0 = arith.constant 0 : i32
    %c0_i32_1 = arith.constant 0 : i32
    return %c0_i32, %c0_i32_0 : i32, i32
  }
  func.func @transform_2(%arg0: i32) -> (i32, i32) {
    %c0_i32 = arith.constant 0 : i32
    %c0_i32_0 = arith.constant 0 : i32
    %c0_i32_1 = arith.constant 0 : i32
    return %c0_i32, %c0_i32_0 : i32, i32
  }
  func.func @transform_3(%arg0: i32) -> (i32, i32) {
    %c0_i32 = arith.constant 0 : i32
    %c0_i32_0 = arith.constant 0 : i32
    %c0_i32_1 = arith.constant 0 : i32
    return %c0_i32, %c0_i32_0 : i32, i32
  }
  func.func @transform_4(%arg0: i32) -> (i32, i32) {
    %c0_i32 = arith.constant 0 : i32
    %c0_i32_0 = arith.constant 0 : i32
    %c0_i32_1 = arith.constant 0 : i32
    return %c0_i32, %c0_i32_0 : i32, i32
  }
  func.func @transform_5(%arg0: i32) -> (i32, i32) {
    %c0_i32 = arith.constant 0 : i32
    %c0_i32_0 = arith.constant 0 : i32
    %c0_i32_1 = arith.constant 0 : i32
    return %c0_i32, %c0_i32_0 : i32, i32
  }
  func.func @transform_6(%arg0: i32) -> (i32, i32) {
    %c0_i32 = arith.constant 0 : i32
    %c0_i32_0 = arith.constant 0 : i32
    %c0_i32_1 = arith.constant 0 : i32
    return %c0_i32, %c0_i32_0 : i32, i32
  }
  func.func @transform_7(%arg0: i32) -> (i32, i32) {
    %c0_i32 = arith.constant 0 : i32
    %c0_i32_0 = arith.constant 0 : i32
    %c0_i32_1 = arith.constant 0 : i32
    return %c0_i32, %c0_i32_0 : i32, i32
  }
  func.func @transform_8(%arg0: i32) -> (i32, i32) {
    %c0_i32 = arith.constant 0 : i32
    %c0_i32_0 = arith.constant 0 : i32
    %c0_i32_1 = arith.constant 0 : i32
    return %c0_i32, %c0_i32_0 : i32, i32
  }
  func.func @transform_9(%arg0: i32) -> (i32, i32) {
    %c0_i32 = arith.constant 0 : i32
    %c0_i32_0 = arith.constant 0 : i32
    return %arg0, %c0_i32 : i32, i32
  }
}

</mosaic_0001>

<bundles_post_ra>
// kernel: tpu_custom_call.1
= control target key start
LH: loop header
LB: loop body
LE: loop exit
PB: predicated region body
PF: predicated region fallthrough
CT: control target
= control target key end

     0   :  { %s1568_s30 = smov 0   ;;  %s1775_s0 = inlined_call_operand.vmem [shape: bf16[128,64], index: 0, kind: input, shape index: {}]   ;;  %s1776_s1 = inlined_call_operand.vmem [shape: bf16[64,128], index: 1, kind: input, shape index: {}]   ;;  %s1777_s2 = inlined_call_operand.vmem [shape: f32[1,128], index: 2, kind: input, shape index: {}]   ;;  %s1778_s3 = inlined_call_operand.vmem [shape: bf16[128,128], index: 3, kind: input, shape index: {}]   ;;  %s1779_s4 = inlined_call_operand.vmem [shape: f32[1,128], index: 4, kind: input, shape index: {}]   ;;  %s1780_s5 = inlined_call_operand.vmem [shape: bf16[128,128], index: 5, kind: input, shape index: {}]   ;;  %s1781_s6 = inlined_call_operand.vmem [shape: f32[1,128], index: 6, kind: input, shape index: {}]   ;;  %s1782_s7 = inlined_call_operand.vmem [shape: bf16[128,32], index: 7, kind: input, shape index: {}]   ;;  %s1783_s8 = inlined_call_operand.vmem [shape: f32[1,32], index: 8, kind: input, shape index: {}]   ;;  %s1784_s9 = inlined_call_operand.vmem [shape: f32[128,32], index: 9, kind: output, shape index: {}]  }
   0x1 LB: > { %s1195_s10 = sadd.s32 4294967295, %s1516_s30   ;;  %p1199_p0 = scmp.ge.s32.totalorder %s1516_s30, 1  ;;  %s1516_s30 = sphi %s1568_s30, %s19_s30  }
   0x2   : > { %p288_p1 = scmp.lt.s32.totalorder %s1516_s30, 3 }
   0x4   : > { %p289_p2 = pnand %p1199_p0, %p288_p1 }
   0x5   : > { %s1200_s13 = sshll.u32 (!%p289_p2), %s1195_s10, 3 }
   0x6   : > { %292 = sbr.rel (%p289_p2) target bundleno = 766 (0x2fe), region = 56  ;;  %p325_p3 = scmp.lt.s32.totalorder (!%p289_p2), %s1200_s13, 15 }
   0xb   : > { %v1345_v0 = vld [vmem:[%s1776_s1 + $0x18] sm:$0xff]  ;;  %v1344_v1 = vld [vmem:[%s1776_s1 + $0x10] sm:$0xff]  ;;  %s1786_s13 = smov (!%p325_p3, %s1200_s13), 15  ;;  %v1343_v2 = vld [vmem:[%s1776_s1 + $0x8] sm:$0xff]  ;;  %vm401_vm0 = vcmask 523264   ;;  %vm1130_vm1 = vcmask 261120  }
   0xc   : > { %418 = vmatpush.bf16.msra.mxu0 %v1345_v0  ;;  %s1201_s18 = sshll.u32 %s1786_s13, 2  ;;  %v1342_v3 = vld [vmem:[%s1776_s1] sm:$0xff]  ;;  %v1353_v8 = vld [vmem:[%s1778_s3 + $0x38] sm:$0xff]  ;;  %v1352_v9 = vld [vmem:[%s1778_s3 + $0x30] sm:$0xff] }
   0xd   : > { %s328_s23 = scalar_lea.vmem %s1775_s0, %s1201_s18  ;;  %611 = vmatpush.bf16.msra.mxu1 %v1353_v8  ;;  %v1351_v10 = vld [vmem:[%s1778_s3 + $0x28] sm:$0xff]  ;;  %v1350_v11 = vld [vmem:[%s1778_s3 + $0x20] sm:$0xff]  ;;  %v1349_v12 = vld [vmem:[%s1778_s3 + $0x18] sm:$0xff] }
   0xe   : > { %v1338_v4 = vld [vmem:[%s328_s23] sm:$0xff]  ;;  %v1339_v5 = vld [vmem:[%s328_s23 + $0x8] sm:$0xff]  ;;  %v1340_v6 = vld [vmem:[%s328_s23 + $0x10] sm:$0xff] }
   0xf   : > { %v1341_v7 = vld [vmem:[%s328_s23 + $0x18] sm:$0xff]  ;;  %v1612_v13 = vld [vmem:[%s1777_s2] ss:$0 sm:$0xff]  ;;  %v1348_v15 = vld [vmem:[%s1778_s3 + $0x10] sm:$0xff]  ;;  %s1203_s23 = sshll.u32 %s1786_s13, 3 }
  0x10   : > { %419 = vmatpush.bf16.msra.mxu0 %v1344_v1  ;;  %v1347_v18 = vld [vmem:[%s1778_s3 + $0x8] sm:$0xff]  ;;  %v1346_v21 = vld [vmem:[%s1778_s3] sm:$0xff]  ;;  %s1745_s26 = scalar_lea.vmem %s1784_s9, %s1203_s23 }
  0x11   : > { %612 = vmatpush.bf16.msra.mxu1 %v1352_v9 }
  0x14   : > { %420 = vmatpush.bf16.msra.mxu0 %v1343_v2 }
  0x15   : > { %613 = vmatpush.bf16.msra.mxu1 %v1351_v10 }
  0x18   : > { %421 = vmatpush.bf16.msra.mxu0 %v1342_v3 }
  0x19   : > { %614 = vmatpush.bf16.msra.mxu1 %v1350_v11 }
  0x1b   : > { %1236 = vmatmul.msk.bf16.vlgmr.msra.gmra.mxu0 %vm401_vm0, %v1338_v4 }
  0x1d   : > { %615 = vmatpush.bf16.msra.mxu1 %v1349_v12 }
  0x21   : > { %616 = vmatpush.bf16.msra.mxu1 %v1348_v15 }
  0x25   : > { %617 = vmatpush.bf16.msra.mxu1 %v1347_v18 }
  0x29   : > { %618 = vmatpush.bf16.msra.mxu1 %v1346_v21 }
  0x2b   : > { %1237 = vmatmul.msk.bf16.gmra.mxu0 %vm401_vm0, %v1339_v5 }
  0x3b   : > { %1238 = vmatmul.msk.bf16.gmra.mxu0 %vm401_vm0, %v1340_v6 }
  0x4b   : > { %1239 = vmatmul.msk.bf16.gmra.mxu0 %vm401_vm0, %v1341_v7 }
  0x98   : > { %v423_v14 = vpop.f32.mrf.mxu0 }
  0x99   : > { %v424_v16 = vadd.f32 %v1612_v13, %v423_v14 }
  0x9b   : > { %v443_v17 = vmin.f32 %v424_v16, 20.0 }
  0x9d   : > { %v451_v19 = vmul.f32 1.442695, %v443_v17 }
  0x9f   : > { %1382 = vpow2.f32 %v451_v19 }
  0xa0   : > { %v425_v20 = vpop.f32.mrf.mxu0 }
  0xa1   : > { %v426_v22 = vadd.f32 %v1612_v13, %v425_v20 }
  0xa3   : > { %v444_v23 = vmin.f32 %v426_v22, 20.0 }
  0xa5   : > { %v1383_v24 = vpop.eup %1382  ;;  %v453_v25 = vmul.f32 1.442695, %v444_v23 }
  0xa6   : > { %v467_v26 = vadd.f32 2.0, %v1383_v24 }
  0xa7   : > { %1384 = vpow2.f32 %v453_v25 }
  0xa8   : > { %v475_v27 = vmul.f32 %v1383_v24, %v467_v26  ;;  %v428_v28 = vpop.f32.mrf.mxu0 }
  0xa9   : > { %v1626_v29 = vadd.f32 %v1612_v13, %v428_v28 }
  0xaa   : > { %v483_v30 = vadd.f32 2.0, %v475_v27  ;;  %v523_v58 = vmul.f32 %v475_v27, %v424_v16 }
  0xab   : > { %v445_v31 = vmin.f32 %v1626_v29, 20.0 }
  0xac   : > { %1386 = vrcp.f32 %v483_v30 }
  0xad   : > { %v1385_v32 = vpop.eup %1384  ;;  %v455_v33 = vmul.f32 1.442695, %v445_v31 }
  0xae   : > { %v468_v34 = vadd.f32 2.0, %v1385_v32 }
  0xaf   : > { %1388 = vpow2.f32 %v455_v33 }
  0xb0   : > { %v476_v35 = vmul.f32 %v1385_v32, %v468_v34  ;;  %v430_v36 = vpop.f32.mrf.mxu0 }
  0xb1   : > { %v431_v37 = vadd.f32 %v1612_v13, %v430_v36 }
  0xb2   : > { %v1387_v38 = vpop.eup %1386  ;;  %v484_v39 = vadd.f32 2.0, %v476_v35  ;;  %v524_v59 = vmul.f32 %v476_v35, %v426_v22 }
  0xb3   : > { %v446_v40 = vmin.f32 %v431_v37, 20.0  ;;  %v499_v43 = vmul.f32 %v1387_v38, %v483_v30 }
  0xb4   : > { %1390 = vrcp.f32 %v484_v39 }
  0xb5   : > { %v1389_v41 = vpop.eup %1388  ;;  %v457_v42 = vmul.f32 1.442695, %v446_v40  ;;  %v507_v48 = vsub.f32 2.0, %v499_v43 }
  0xb6   : > { %v469_v44 = vadd.f32 2.0, %v1389_v41 }
  0xb7   : > { %1392 = vpow2.f32 %v457_v42  ;;  %v515_v56 = vmul.f32 %v1387_v38, %v507_v48 }
  0xb8   : > { %v477_v45 = vmul.f32 %v1389_v41, %v469_v44  ;;  %v433_v46 = vpop.f32.mrf.mxu0 }
  0xb9   : > { %v1631_v47 = vadd.f32 %v1612_v13, %v433_v46  ;;  %v531_v0 = vmul.f32 %v523_v58, %v515_v56 }
  0xba   : > { %v1391_v49 = vpop.eup %1390  ;;  %v485_v50 = vadd.f32 2.0, %v477_v45  ;;  %v525_v24 = vmul.f32 %v477_v45, %v1626_v29 }
  0xbb   : > { %v447_v51 = vmin.f32 %v1631_v47, 20.0  ;;  %v500_v52 = vmul.f32 %v1391_v49, %v484_v39 }
  0xbc   : > { %1394 = vrcp.f32 %v485_v50 }
  0xbd   : > { %v1393_v53 = vpop.eup %1392  ;;  %v459_v54 = vmul.f32 1.442695, %v447_v51  ;;  %v508_v55 = vsub.f32 2.0, %v500_v52 }
  0xbe   : > { %v470_v57 = vadd.f32 2.0, %v1393_v53 }
  0xbf   : > { %1396 = vpow2.f32 %v459_v54  ;;  %v516_v60 = vmul.f32 %v1391_v49, %v508_v55 }
  0xc0   : > { %v478_v61 = vmul.f32 %v1393_v53, %v470_v57  ;;  %v435_v62 = vpop.f32.mrf.mxu0 }
  0xc1   : > { %v436_v63 = vadd.f32 %v1612_v13, %v435_v62  ;;  %v532_v1 = vmul.f32 %v524_v59, %v516_v60 }
  0xc2   : > { %v1395_v2 = vpop.eup %1394  ;;  %v486_v3 = vadd.f32 2.0, %v478_v61  ;;  %v526_v25 = vmul.f32 %v478_v61, %v431_v37 }
  0xc3   : > { %v448_v4 = vmin.f32 %v436_v63, 20.0  ;;  %v539_v5 = vpack.c.bf16 %v532_v1, %v531_v0  ;;  %v501_v8 = vmul.f32 %v1395_v2, %v485_v50 }
  0xc4   : > { %1398 = vrcp.f32 %v486_v3 }
  0xc5   : > { %v1397_v6 = vpop.eup %1396  ;;  %v461_v7 = vmul.f32 1.442695, %v448_v4  ;;  %619 = vmatmul.bf16.vlgmr.msra.gmra.mxu1 %v539_v5  ;;  %v509_v14 = vsub.f32 2.0, %v501_v8  ;;  %v1361_v5 = vld [vmem:[%s1780_s5 + $0x38] sm:$0xff]  ;;  %v1358_v8 = vld [vmem:[%s1780_s5 + $0x20] sm:$0xff] }
  0xc6   : > { %v471_v9 = vadd.f32 2.0, %v1397_v6  ;;  %808 = vmatpush.bf16.msra.mxu2 %v1361_v5 }
  0xc7   : > { %1400 = vpow2.f32 %v461_v7  ;;  %v517_v22 = vmul.f32 %v1395_v2, %v509_v14  ;;  %v1359_v7 = vld [vmem:[%s1780_s5 + $0x28] sm:$0xff] }
  0xc8   : > { %v479_v10 = vmul.f32 %v1397_v6, %v471_v9  ;;  %v438_v11 = vpop.f32.mrf.mxu0  ;;  %v1360_v6 = vld [vmem:[%s1780_s5 + $0x30] sm:$0xff]  ;;  %v1357_v9 = vld [vmem:[%s1780_s5 + $0x18] sm:$0xff] }
  0xc9   : > { %v439_v12 = vadd.f32 %v1612_v13, %v438_v11  ;;  %v533_v31 = vmul.f32 %v525_v24, %v517_v22 }
  0xca   : > { %v1399_v15 = vpop.eup %1398  ;;  %v487_v16 = vadd.f32 2.0, %v479_v10  ;;  %v527_v49 = vmul.f32 %v479_v10, %v1631_v47  ;;  %809 = vmatpush.bf16.msra.mxu2 %v1360_v6  ;;  %v1657_v10 = vld [vmem:[%s1779_s4] ss:$0 sm:$0xff] }
  0xcb   : > { %v449_v17 = vmin.f32 %v439_v12, 20.0  ;;  %v502_v18 = vmul.f32 %v1399_v15, %v486_v3 }
  0xcc   : > { %1402 = vrcp.f32 %v487_v16 }
  0xcd   : > { %v1401_v19 = vpop.eup %1400  ;;  %v463_v20 = vmul.f32 1.442695, %v449_v17  ;;  %v510_v21 = vsub.f32 2.0, %v502_v18 }
  0xce   : > { %v472_v23 = vadd.f32 2.0, %v1401_v19  ;;  %810 = vmatpush.bf16.msra.mxu2 %v1359_v7 }
  0xcf   : > { %1404 = vpow2.f32 %v463_v20  ;;  %v518_v26 = vmul.f32 %v1399_v15, %v510_v21 }
  0xd0   : > { %v480_v27 = vmul.f32 %v1401_v19, %v472_v23  ;;  %v440_v28 = vpop.f32.mrf.mxu0  ;;  %v1354_v19 = vld [vmem:[%s1780_s5] sm:$0xff] }
  0xd1   : > { %v441_v30 = vadd.f32 %v1612_v13, %v440_v28  ;;  %v534_v32 = vmul.f32 %v526_v25, %v518_v26 }
  0xd2   : > { %v1403_v33 = vpop.eup %1402  ;;  %v488_v34 = vadd.f32 2.0, %v480_v27  ;;  %v528_v50 = vmul.f32 %v480_v27, %v436_v63  ;;  %811 = vmatpush.bf16.msra.mxu2 %v1358_v8 }
  0xd3   : > { %v450_v35 = vmin.f32 %v441_v30, 20.0  ;;  %v540_v36 = vpack.c.bf16 %v534_v32, %v533_v31  ;;  %v503_v40 = vmul.f32 %v1403_v33, %v487_v16  ;;  %v1355_v16 = vld [vmem:[%s1780_s5 + $0x8] sm:$0xff] }
  0xd4   : > { %1406 = vrcp.f32 %v488_v34 }
  0xd5   : > { %v1405_v38 = vpop.eup %1404  ;;  %v465_v39 = vmul.f32 1.442695, %v450_v35  ;;  %624 = vmatmul.bf16.gmra.mxu1 %v540_v36  ;;  %v511_v37 = vsub.f32 2.0, %v503_v40 }
  0xd6   : > { %v473_v41 = vadd.f32 2.0, %v1405_v38  ;;  %812 = vmatpush.bf16.msra.mxu2 %v1357_v9 }
  0xd7   : > { %1408 = vpow2.f32 %v465_v39  ;;  %v519_v46 = vmul.f32 %v1403_v33, %v511_v37 }
  0xd8   : > { %v481_v29 = vmul.f32 %v1405_v38, %v473_v41 }
  0xd9   : > { %v535_v53 = vmul.f32 %v527_v49, %v519_v46 }
  0xda   : > { %v1407_v42 = vpop.eup %1406  ;;  %v489_v43 = vadd.f32 2.0, %v481_v29  ;;  %v529_v1 = vmul.f32 %v481_v29, %v439_v12  ;;  %v1356_v12 = vld [vmem:[%s1780_s5 + $0x10] sm:$0xff] }
  0xdb   : > { %v504_v44 = vmul.f32 %v1407_v42, %v488_v34  ;;  %813 = vmatpush.bf16.msra.mxu2 %v1356_v12 }
  0xdc   : > { %1410 = vrcp.f32 %v489_v43 }
  0xdd   : > { %v1409_v13 = vpop.eup %1408  ;;  %v512_v45 = vsub.f32 2.0, %v504_v44 }
  0xde   : > { %v474_v48 = vadd.f32 2.0, %v1409_v13 }
  0xdf   : > { %v520_v51 = vmul.f32 %v1407_v42, %v512_v45  ;;  %814 = vmatpush.bf16.msra.mxu2 %v1355_v16 }
  0xe0   : > { %v482_v52 = vmul.f32 %v1409_v13, %v474_v48 }
  0xe1   : > { %v536_v54 = vmul.f32 %v528_v50, %v520_v51 }
  0xe2   : > { %v1411_v55 = vpop.eup %1410  ;;  %v490_v56 = vadd.f32 2.0, %v482_v52  ;;  %v530_v2 = vmul.f32 %v482_v52, %v441_v30 }
  0xe3   : > { %v541_v57 = vpack.c.bf16 %v536_v54, %v535_v53  ;;  %v505_v58 = vmul.f32 %v1411_v55, %v489_v43  ;;  %815 = vmatpush.bf16.msra.mxu2 %v1354_v19 }
  0xe4   : > { %1412 = vrcp.f32 %v490_v56 }
  0xe5   : > { %629 = vmatmul.bf16.gmra.mxu1 %v541_v57  ;;  %v513_v59 = vsub.f32 2.0, %v505_v58 }
  0xe7   : > { %v521_v0 = vmul.f32 %v1411_v55, %v513_v59 }
  0xe9   : > { %v537_v47 = vmul.f32 %v529_v1, %v521_v0 }
  0xea   : > { %v1413_v60 = vpop.eup %1412 }
  0xeb   : > { %v506_v61 = vmul.f32 %v1413_v60, %v490_v56 }
  0xed   : > { %v514_v62 = vsub.f32 2.0, %v506_v61 }
  0xef   : > { %v522_v3 = vmul.f32 %v1413_v60, %v514_v62 }
  0xf1   : > { %v538_v63 = vmul.f32 %v530_v2, %v522_v3 }
  0xf3   : > { %v542_v4 = vpack.c.bf16 %v538_v63, %v537_v47 }
  0xf5   : > { %634 = vmatmul.bf16.gmra.mxu1 %v542_v4 }
 0x142   : > { %v620_v11 = vpop.f32.mrf.mxu1 }
 0x143   : > { %v621_v14 = vadd.f32 %v1657_v10, %v620_v11 }
 0x145   : > { %v640_v15 = vmin.f32 %v621_v14, 20.0 }
 0x147   : > { %v648_v17 = vmul.f32 1.442695, %v640_v15 }
 0x149   : > { %1414 = vpow2.f32 %v648_v17 }
 0x14a   : > { %v622_v18 = vpop.f32.mrf.mxu1 }
 0x14b   : > { %v623_v20 = vadd.f32 %v1657_v10, %v622_v18 }
 0x14d   : > { %v641_v21 = vmin.f32 %v623_v20, 20.0 }
 0x14f   : > { %v1415_v22 = vpop.eup %1414  ;;  %v650_v23 = vmul.f32 1.442695, %v641_v21 }
 0x150   : > { %v664_v24 = vadd.f32 2.0, %v1415_v22 }
 0x151   : > { %1416 = vpow2.f32 %v650_v23 }
 0x152   : > { %v672_v25 = vmul.f32 %v1415_v22, %v664_v24  ;;  %v625_v26 = vpop.f32.mrf.mxu1 }
 0x153   : > { %v1671_v27 = vadd.f32 %v1657_v10, %v625_v26 }
 0x154   : > { %v680_v28 = vadd.f32 2.0, %v672_v25  ;;  %v720_v56 = vmul.f32 %v672_v25, %v621_v14 }
 0x155   : > { %v642_v30 = vmin.f32 %v1671_v27, 20.0 }
 0x156   : > { %1418 = vrcp.f32 %v680_v28 }
 0x157   : > { %v1417_v31 = vpop.eup %1416  ;;  %v652_v32 = vmul.f32 1.442695, %v642_v30 }
 0x158   : > { %v665_v33 = vadd.f32 2.0, %v1417_v31 }
 0x159   : > { %1420 = vpow2.f32 %v652_v32 }
 0x15a   : > { %v673_v34 = vmul.f32 %v1417_v31, %v665_v33  ;;  %v627_v35 = vpop.f32.mrf.mxu1 }
 0x15b   : > { %v628_v36 = vadd.f32 %v1657_v10, %v627_v35 }
 0x15c   : > { %v1419_v38 = vpop.eup %1418  ;;  %v681_v39 = vadd.f32 2.0, %v673_v34  ;;  %v721_v57 = vmul.f32 %v673_v34, %v623_v20 }
 0x15d   : > { %v643_v40 = vmin.f32 %v628_v36, 20.0  ;;  %v696_v37 = vmul.f32 %v1419_v38, %v680_v28 }
 0x15e   : > { %1422 = vrcp.f32 %v681_v39 }
 0x15f   : > { %v1421_v41 = vpop.eup %1420  ;;  %v654_v29 = vmul.f32 1.442695, %v643_v40  ;;  %v704_v45 = vsub.f32 2.0, %v696_v37 }
 0x160   : > { %v666_v42 = vadd.f32 2.0, %v1421_v41 }
 0x161   : > { %1424 = vpow2.f32 %v654_v29  ;;  %v712_v54 = vmul.f32 %v1419_v38, %v704_v45 }
 0x162   : > { %v674_v43 = vmul.f32 %v1421_v41, %v666_v42  ;;  %v630_v44 = vpop.f32.mrf.mxu1 }
 0x163   : > { %v1676_v13 = vadd.f32 %v1657_v10, %v630_v44  ;;  %v728_v62 = vmul.f32 %v720_v56, %v712_v54 }
 0x164   : > { %v1423_v46 = vpop.eup %1422  ;;  %v682_v48 = vadd.f32 2.0, %v674_v43  ;;  %v722_v22 = vmul.f32 %v674_v43, %v1671_v27 }
 0x165   : > { %v644_v49 = vmin.f32 %v1676_v13, 20.0  ;;  %v697_v50 = vmul.f32 %v1423_v46, %v681_v39 }
 0x166   : > { %1426 = vrcp.f32 %v682_v48 }
 0x167   : > { %v1425_v51 = vpop.eup %1424  ;;  %v656_v52 = vmul.f32 1.442695, %v644_v49  ;;  %v705_v53 = vsub.f32 2.0, %v697_v50 }
 0x168   : > { %v667_v55 = vadd.f32 2.0, %v1425_v51 }
 0x169   : > { %1428 = vpow2.f32 %v656_v52  ;;  %v713_v58 = vmul.f32 %v1423_v46, %v705_v53 }
 0x16a   : > { %v675_v59 = vmul.f32 %v1425_v51, %v667_v55  ;;  %v632_v60 = vpop.f32.mrf.mxu1 }
 0x16b   : > { %v633_v61 = vadd.f32 %v1657_v10, %v632_v60  ;;  %v729_v0 = vmul.f32 %v721_v57, %v713_v58 }
 0x16c   : > { %v1427_v1 = vpop.eup %1426  ;;  %v683_v2 = vadd.f32 2.0, %v675_v59  ;;  %v723_v23 = vmul.f32 %v675_v59, %v628_v36 }
 0x16d   : > { %v645_v3 = vmin.f32 %v633_v61, 20.0  ;;  %v736_v47 = vpack.c.bf16 %v729_v0, %v728_v62  ;;  %v698_v5 = vmul.f32 %v1427_v1, %v682_v48 }
 0x16e   : > { %1430 = vrcp.f32 %v683_v2 }
 0x16f   : > { %v1429_v63 = vpop.eup %1428  ;;  %v658_v4 = vmul.f32 1.442695, %v645_v3  ;;  %816 = vmatmul.bf16.vlgmr.msra.gmra.mxu2 %v736_v47  ;;  %v706_v11 = vsub.f32 2.0, %v698_v5  ;;  %v1369_v47 = vld [vmem:[%s1782_s7 + $0x38] sm:$0xff]  ;;  %v1366_v5 = vld [vmem:[%s1782_s7 + $0x20] sm:$0xff] }
 0x170   : > { %v668_v6 = vadd.f32 2.0, %v1429_v63  ;;  %1005 = vmatpush.bf16.msra.mxu3 %v1369_v47 }
 0x171   : > { %1432 = vpow2.f32 %v658_v4  ;;  %v714_v20 = vmul.f32 %v1427_v1, %v706_v11  ;;  %v1367_v4 = vld [vmem:[%s1782_s7 + $0x28] sm:$0xff] }
 0x172   : > { %v676_v7 = vmul.f32 %v1429_v63, %v668_v6  ;;  %v635_v8 = vpop.f32.mrf.mxu1  ;;  %v1368_v63 = vld [vmem:[%s1782_s7 + $0x30] sm:$0xff]  ;;  %v1365_v6 = vld [vmem:[%s1782_s7 + $0x18] sm:$0xff] }
 0x173   : > { %v636_v9 = vadd.f32 %v1657_v10, %v635_v8  ;;  %v730_v30 = vmul.f32 %v722_v22, %v714_v20 }
 0x174   : > { %v1431_v12 = vpop.eup %1430  ;;  %v684_v14 = vadd.f32 2.0, %v676_v7  ;;  %v724_v46 = vmul.f32 %v676_v7, %v1676_v13  ;;  %1006 = vmatpush.bf16.msra.mxu3 %v1368_v63  ;;  %v1702_v7 = vld [vmem:[%s1781_s6] ss:$0 sm:$0xff] }
 0x175   : > { %v646_v15 = vmin.f32 %v636_v9, 20.0  ;;  %v699_v16 = vmul.f32 %v1431_v12, %v683_v2 }
 0x176   : > { %1434 = vrcp.f32 %v684_v14 }
 0x177   : > { %v1433_v17 = vpop.eup %1432  ;;  %v660_v18 = vmul.f32 1.442695, %v646_v15  ;;  %v707_v19 = vsub.f32 2.0, %v699_v16 }
 0x178   : > { %v669_v21 = vadd.f32 2.0, %v1433_v17  ;;  %1007 = vmatpush.bf16.msra.mxu3 %v1367_v4 }
 0x179   : > { %1436 = vpow2.f32 %v660_v18  ;;  %v715_v24 = vmul.f32 %v1431_v12, %v707_v19 }
 0x17a   : > { %v677_v25 = vmul.f32 %v1433_v17, %v669_v21  ;;  %v637_v26 = vpop.f32.mrf.mxu1  ;;  %v1362_v17 = vld [vmem:[%s1782_s7] sm:$0xff] }
 0x17b   : > { %v638_v28 = vadd.f32 %v1657_v10, %v637_v26  ;;  %v731_v31 = vmul.f32 %v723_v23, %v715_v24 }
 0x17c   : > { %v1435_v32 = vpop.eup %1434  ;;  %v685_v33 = vadd.f32 2.0, %v677_v25  ;;  %v725_v48 = vmul.f32 %v677_v25, %v633_v61  ;;  %1008 = vmatpush.bf16.msra.mxu3 %v1366_v5 }
 0x17d   : > { %v647_v34 = vmin.f32 %v638_v28, 20.0  ;;  %v737_v35 = vpack.c.bf16 %v731_v31, %v730_v30  ;;  %v700_v40 = vmul.f32 %v1435_v32, %v684_v14  ;;  %v1363_v14 = vld [vmem:[%s1782_s7 + $0x8] sm:$0xff] }
 0x17e   : > { %1438 = vrcp.f32 %v685_v33 }
 0x17f   : > { %v1437_v38 = vpop.eup %1436  ;;  %v662_v39 = vmul.f32 1.442695, %v647_v34  ;;  %821 = vmatmul.bf16.gmra.mxu2 %v737_v35  ;;  %v708_v36 = vsub.f32 2.0, %v700_v40 }
 0x180   : > { %v670_v41 = vadd.f32 2.0, %v1437_v38  ;;  %1009 = vmatpush.bf16.msra.mxu3 %v1365_v6 }
 0x181   : > { %1440 = vpow2.f32 %v662_v39  ;;  %v716_v44 = vmul.f32 %v1435_v32, %v708_v36 }
 0x182   : > { %v678_v27 = vmul.f32 %v1437_v38, %v670_v41 }
 0x183   : > { %v732_v51 = vmul.f32 %v724_v46, %v716_v44 }
 0x184   : > { %v1439_v29 = vpop.eup %1438  ;;  %v686_v37 = vadd.f32 2.0, %v678_v27  ;;  %v726_v0 = vmul.f32 %v678_v27, %v636_v9  ;;  %v1364_v9 = vld [vmem:[%s1782_s7 + $0x10] sm:$0xff] }
 0x185   : > { %v701_v42 = vmul.f32 %v1439_v29, %v685_v33  ;;  %1010 = vmatpush.bf16.msra.mxu3 %v1364_v9 }
 0x186   : > { %1442 = vrcp.f32 %v686_v37 }
 0x187   : > { %v1441_v10 = vpop.eup %1440  ;;  %v709_v43 = vsub.f32 2.0, %v701_v42 }
 0x188   : > { %v671_v45 = vadd.f32 2.0, %v1441_v10 }
 0x189   : > { %v717_v49 = vmul.f32 %v1439_v29, %v709_v43  ;;  %1011 = vmatpush.bf16.msra.mxu3 %v1363_v14 }
 0x18a   : > { %v679_v50 = vmul.f32 %v1441_v10, %v671_v45 }
 0x18b   : > { %v733_v52 = vmul.f32 %v725_v48, %v717_v49 }
 0x18c   : > { %v1443_v53 = vpop.eup %1442  ;;  %v687_v54 = vadd.f32 2.0, %v679_v50  ;;  %v727_v1 = vmul.f32 %v679_v50, %v638_v28 }
 0x18d   : > { %v738_v55 = vpack.c.bf16 %v733_v52, %v732_v51  ;;  %v702_v56 = vmul.f32 %v1443_v53, %v686_v37  ;;  %1012 = vmatpush.bf16.msra.mxu3 %v1362_v17 }
 0x18e   : > { %1444 = vrcp.f32 %v687_v54 }
 0x18f   : > { %826 = vmatmul.bf16.gmra.mxu2 %v738_v55  ;;  %v710_v57 = vsub.f32 2.0, %v702_v56 }
 0x191   : > { %v718_v62 = vmul.f32 %v1443_v53, %v710_v57 }
 0x193   : > { %v734_v13 = vmul.f32 %v726_v0, %v718_v62 }
 0x194   : > { %v1445_v58 = vpop.eup %1444 }
 0x195   : > { %v703_v59 = vmul.f32 %v1445_v58, %v687_v54 }
 0x197   : > { %v711_v60 = vsub.f32 2.0, %v703_v59 }
 0x199   : > { %v719_v2 = vmul.f32 %v1445_v58, %v711_v60 }
 0x19b   : > { %v735_v61 = vmul.f32 %v727_v1, %v719_v2 }
 0x19d   : > { %v739_v3 = vpack.c.bf16 %v735_v61, %v734_v13 }
 0x19f   : > { %831 = vmatmul.bf16.gmra.mxu2 %v739_v3 }
 0x1f2   : > { %v817_v8 = vpop.f32.mrf.mxu2 }
 0x1f3   : > { %v818_v11 = vadd.f32 %v1702_v7, %v817_v8 }
 0x1f5   : > { %v837_v12 = vmin.f32 %v818_v11, 20.0 }
 0x1f7   : > { %v845_v15 = vmul.f32 1.442695, %v837_v12 }
 0x1f9   : > { %1446 = vpow2.f32 %v845_v15 }
 0x1fa   : > { %v819_v16 = vpop.f32.mrf.mxu2 }
 0x1fb   : > { %v820_v18 = vadd.f32 %v1702_v7, %v819_v16 }
 0x1fd   : > { %v838_v19 = vmin.f32 %v820_v18, 20.0 }
 0x1ff   : > { %v1447_v20 = vpop.eup %1446  ;;  %v847_v21 = vmul.f32 1.442695, %v838_v19 }
 0x200   : > { %v861_v22 = vadd.f32 2.0, %v1447_v20 }
 0x201   : > { %1448 = vpow2.f32 %v847_v21 }
 0x202   : > { %v869_v23 = vmul.f32 %v1447_v20, %v861_v22  ;;  %v822_v24 = vpop.f32.mrf.mxu2 }
 0x203   : > { %v1716_v25 = vadd.f32 %v1702_v7, %v822_v24 }
 0x204   : > { %v877_v26 = vadd.f32 2.0, %v869_v23  ;;  %v917_v54 = vmul.f32 %v869_v23, %v818_v11 }
 0x205   : > { %v839_v28 = vmin.f32 %v1716_v25, 20.0 }
 0x206   : > { %1450 = vrcp.f32 %v877_v26 }
 0x207   : > { %v1449_v30 = vpop.eup %1448  ;;  %v849_v31 = vmul.f32 1.442695, %v839_v28 }
 0x208   : > { %v862_v32 = vadd.f32 2.0, %v1449_v30 }
 0x209   : > { %1452 = vpow2.f32 %v849_v31 }
 0x20a   : > { %v870_v33 = vmul.f32 %v1449_v30, %v862_v32  ;;  %v824_v34 = vpop.f32.mrf.mxu2 }
 0x20b   : > { %v825_v35 = vadd.f32 %v1702_v7, %v824_v34 }
 0x20c   : > { %v1451_v38 = vpop.eup %1450  ;;  %v878_v39 = vadd.f32 2.0, %v870_v33  ;;  %v918_v55 = vmul.f32 %v870_v33, %v820_v18 }
 0x20d   : > { %v840_v40 = vmin.f32 %v825_v35, 20.0  ;;  %v893_v36 = vmul.f32 %v1451_v38, %v877_v26 }
 0x20e   : > { %1454 = vrcp.f32 %v878_v39 }
 0x20f   : > { %v1453_v41 = vpop.eup %1452  ;;  %v851_v27 = vmul.f32 1.442695, %v840_v40  ;;  %v901_v43 = vsub.f32 2.0, %v893_v36 }
 0x210   : > { %v863_v29 = vadd.f32 2.0, %v1453_v41 }
 0x211   : > { %1456 = vpow2.f32 %v851_v27  ;;  %v909_v52 = vmul.f32 %v1451_v38, %v901_v43 }
 0x212   : > { %v871_v37 = vmul.f32 %v1453_v41, %v863_v29  ;;  %v827_v42 = vpop.f32.mrf.mxu2 }
 0x213   : > { %v1721_v10 = vadd.f32 %v1702_v7, %v827_v42  ;;  %v925_v60 = vmul.f32 %v917_v54, %v909_v52 }
 0x214   : > { %v1455_v44 = vpop.eup %1454  ;;  %v879_v45 = vadd.f32 2.0, %v871_v37  ;;  %v919_v20 = vmul.f32 %v871_v37, %v1716_v25 }
 0x215   : > { %v841_v46 = vmin.f32 %v1721_v10, 20.0  ;;  %v894_v48 = vmul.f32 %v1455_v44, %v878_v39 }
 0x216   : > { %1458 = vrcp.f32 %v879_v45 }
 0x217   : > { %v1457_v49 = vpop.eup %1456  ;;  %v853_v50 = vmul.f32 1.442695, %v841_v46  ;;  %v902_v51 = vsub.f32 2.0, %v894_v48 }
 0x218   : > { %v864_v53 = vadd.f32 2.0, %v1457_v49 }
 0x219   : > { %1460 = vpow2.f32 %v853_v50  ;;  %v910_v56 = vmul.f32 %v1455_v44, %v902_v51 }
 0x21a   : > { %v872_v57 = vmul.f32 %v1457_v49, %v864_v53  ;;  %v829_v58 = vpop.f32.mrf.mxu2 }
 0x21b   : > { %v830_v59 = vadd.f32 %v1702_v7, %v829_v58  ;;  %v926_v62 = vmul.f32 %v918_v55, %v910_v56 }
 0x21c   : > { %v1459_v0 = vpop.eup %1458  ;;  %v880_v1 = vadd.f32 2.0, %v872_v57  ;;  %v920_v21 = vmul.f32 %v872_v57, %v825_v35 }
 0x21d   : > { %v842_v2 = vmin.f32 %v830_v59, 20.0  ;;  %v933_v13 = vpack.c.bf16 %v926_v62, %v925_v60  ;;  %v895_v47 = vmul.f32 %v1459_v0, %v879_v45 }
 0x21e   : > { %1462 = vrcp.f32 %v880_v1 }
 0x21f   : > { %v1461_v61 = vpop.eup %1460  ;;  %v855_v3 = vmul.f32 1.442695, %v842_v2  ;;  %1013 = vmatmul.bf16.vlgmr.msra.gmra.mxu3 %v933_v13  ;;  %v903_v8 = vsub.f32 2.0, %v895_v47  ;;  %v1732_v13 = vld [vmem:[%s1783_s8] ss:$0 sm:$0xff] }
 0x220   : > { %v865_v63 = vadd.f32 2.0, %v1461_v61 }
 0x221   : > { %1464 = vpow2.f32 %v855_v3  ;;  %v911_v18 = vmul.f32 %v1459_v0, %v903_v8 }
 0x222   : > { %v873_v4 = vmul.f32 %v1461_v61, %v865_v63  ;;  %v832_v5 = vpop.f32.mrf.mxu2 }
 0x223   : > { %v833_v6 = vadd.f32 %v1702_v7, %v832_v5  ;;  %v927_v28 = vmul.f32 %v919_v20, %v911_v18 }
 0x224   : > { %v1463_v9 = vpop.eup %1462  ;;  %v881_v11 = vadd.f32 2.0, %v873_v4  ;;  %v921_v44 = vmul.f32 %v873_v4, %v1721_v10 }
 0x225   : > { %v843_v12 = vmin.f32 %v833_v6, 20.0  ;;  %v896_v14 = vmul.f32 %v1463_v9, %v880_v1 }
 0x226   : > { %1466 = vrcp.f32 %v881_v11 }
 0x227   : > { %v1465_v15 = vpop.eup %1464  ;;  %v857_v16 = vmul.f32 1.442695, %v843_v12  ;;  %v904_v17 = vsub.f32 2.0, %v896_v14 }
 0x228   : > { %v866_v19 = vadd.f32 2.0, %v1465_v15 }
 0x229   : > { %1468 = vpow2.f32 %v857_v16  ;;  %v912_v22 = vmul.f32 %v1463_v9, %v904_v17 }
 0x22a   : > { %v874_v23 = vmul.f32 %v1465_v15, %v866_v19  ;;  %v834_v24 = vpop.f32.mrf.mxu2 }
 0x22b   : > { %v835_v26 = vadd.f32 %v1702_v7, %v834_v24  ;;  %v928_v30 = vmul.f32 %v920_v21, %v912_v22 }
 0x22c   : > { %v1467_v31 = vpop.eup %1466  ;;  %v882_v32 = vadd.f32 2.0, %v874_v23  ;;  %v922_v45 = vmul.f32 %v874_v23, %v830_v59 }
 0x22d   : > { %v844_v33 = vmin.f32 %v835_v26, 20.0  ;;  %v934_v34 = vpack.c.bf16 %v928_v30, %v927_v28  ;;  %v897_v40 = vmul.f32 %v1467_v31, %v881_v11 }
 0x22e   : > { %1470 = vrcp.f32 %v882_v32 }
 0x22f   : > { %v1469_v38 = vpop.eup %1468  ;;  %v859_v39 = vmul.f32 1.442695, %v844_v33  ;;  %1018 = vmatmul.bf16.gmra.mxu3 %v934_v34  ;;  %v905_v35 = vsub.f32 2.0, %v897_v40 }
 0x230   : > { %v867_v41 = vadd.f32 2.0, %v1469_v38 }
 0x231   : > { %1472 = vpow2.f32 %v859_v39  ;;  %v913_v42 = vmul.f32 %v1467_v31, %v905_v35 }
 0x232   : > { %v875_v25 = vmul.f32 %v1469_v38, %v867_v41 }
 0x233   : > { %v929_v49 = vmul.f32 %v921_v44, %v913_v42 }
 0x234   : > { %v1471_v27 = vpop.eup %1470  ;;  %v883_v36 = vadd.f32 2.0, %v875_v25  ;;  %v923_v62 = vmul.f32 %v875_v25, %v833_v6 }
 0x235   : > { %v898_v29 = vmul.f32 %v1471_v27, %v882_v32 }
 0x236   : > { %1474 = vrcp.f32 %v883_v36 }
 0x237   : > { %v1473_v7 = vpop.eup %1472  ;;  %v906_v37 = vsub.f32 2.0, %v898_v29 }
 0x238   : > { %v868_v43 = vadd.f32 2.0, %v1473_v7 }
 0x239   : > { %v914_v46 = vmul.f32 %v1471_v27, %v906_v37 }
 0x23a   : > { %v876_v48 = vmul.f32 %v1473_v7, %v868_v43 }
 0x23b   : > { %v930_v50 = vmul.f32 %v922_v45, %v914_v46 }
 0x23c   : > { %v1475_v51 = vpop.eup %1474  ;;  %v884_v52 = vadd.f32 2.0, %v876_v48  ;;  %v924_v0 = vmul.f32 %v876_v48, %v835_v26 }
 0x23d   : > { %v935_v53 = vpack.c.bf16 %v930_v50, %v929_v49  ;;  %v899_v54 = vmul.f32 %v1475_v51, %v883_v36 }
 0x23e   : > { %1476 = vrcp.f32 %v884_v52 }
 0x23f   : > { %1023 = vmatmul.bf16.gmra.mxu3 %v935_v53  ;;  %v907_v55 = vsub.f32 2.0, %v899_v54 }
 0x241   : > { %v915_v60 = vmul.f32 %v1475_v51, %v907_v55 }
 0x243   : > { %v931_v10 = vmul.f32 %v923_v62, %v915_v60 }
 0x244   : > { %v1477_v56 = vpop.eup %1476 }
 0x245   : > { %v900_v57 = vmul.f32 %v1477_v56, %v884_v52 }
 0x247   : > { %v908_v58 = vsub.f32 2.0, %v900_v57 }
 0x249   : > { %v916_v1 = vmul.f32 %v1477_v56, %v908_v58 }
 0x24b   : > { %v932_v59 = vmul.f32 %v924_v0, %v916_v1 }
 0x24d   : > { %v936_v2 = vpack.c.bf16 %v932_v59, %v931_v10 }
 0x24f   : > { %1028 = vmatmul.bf16.gmra.mxu3 %v936_v2 }
 0x2a2   : > { %v1014_v61 = vpop.f32.mrf.mxu3 }
 0x2a3   : > { %v1015_v3 = vadd.f32 %v1732_v13, %v1014_v61 }
 0x2a5   : > { %v1034_v47 = vmin.f32 %v1015_v3, 20.0 }
 0x2a7   : > { %v1042_v63 = vmul.f32 1.442695, %v1034_v47 }
 0x2a9   : > { %1478 = vpow2.f32 %v1042_v63 }
 0x2aa   : > { %v1016_v4 = vpop.f32.mrf.mxu3 }
 0x2ab   : > { %v1017_v5 = vadd.f32 %v1732_v13, %v1016_v4 }
 0x2ad   : > { %v1035_v6 = vmin.f32 %v1017_v5, 20.0 }
 0x2af   : > { %v1479_v8 = vpop.eup %1478  ;;  %v1044_v9 = vmul.f32 1.442695, %v1035_v6 }
 0x2b0   : > { %v1058_v11 = vadd.f32 2.0, %v1479_v8 }
 0x2b1   : > { %1480 = vpow2.f32 %v1044_v9 }
 0x2b2   : > { %v1066_v12 = vmul.f32 %v1479_v8, %v1058_v11  ;;  %v1019_v14 = vpop.f32.mrf.mxu3 }
 0x2b3   : > { %v1020_v15 = vadd.f32 %v1732_v13, %v1019_v14 }
 0x2b4   : > { %v1074_v16 = vadd.f32 2.0, %v1066_v12  ;;  %v1114_v39 = vmul.f32 %v1066_v12, %v1015_v3 }
 0x2b5   : > { %v1036_v17 = vmin.f32 %v1020_v15, 20.0 }
 0x2b6   : > { %1482 = vrcp.f32 %v1074_v16 }
 0x2b7   : > { %v1481_v18 = vpop.eup %1480  ;;  %v1046_v19 = vmul.f32 1.442695, %v1036_v17 }
 0x2b8   : > { %v1059_v20 = vadd.f32 2.0, %v1481_v18 }
 0x2b9   : > { %1484 = vpow2.f32 %v1046_v19 }
 0x2ba   : > { %v1067_v21 = vmul.f32 %v1481_v18, %v1059_v20  ;;  %v1021_v22 = vpop.f32.mrf.mxu3 }
 0x2bb   : > { %v1738_v23 = vadd.f32 %v1732_v13, %v1021_v22 }
 0x2bc   : > { %v1483_v24 = vpop.eup %1482  ;;  %v1075_v26 = vadd.f32 2.0, %v1067_v21  ;;  %v1115_v46 = vmul.f32 %v1067_v21, %v1017_v5 }
 0x2bd   : > { %v1090_v28 = vmul.f32 %v1483_v24, %v1074_v16  ;;  %v1037_v30 = vmin.f32 %v1738_v23, 20.0 }
 0x2be   : > { %1486 = vrcp.f32 %v1075_v26 }
 0x2bf   : > { %v1485_v31 = vpop.eup %1484  ;;  %v1098_v32 = vsub.f32 2.0, %v1090_v28  ;;  %v1048_v33 = vmul.f32 1.442695, %v1037_v30 }
 0x2c0   : > { %v1060_v34 = vadd.f32 2.0, %v1485_v31 }
 0x2c1   : > { %v1106_v38 = vmul.f32 %v1483_v24, %v1098_v32  ;;  %1488 = vpow2.f32 %v1048_v33 }
 0x2c2   : > { %v1068_v40 = vmul.f32 %v1485_v31, %v1060_v34  ;;  %v1024_v41 = vpop.f32.mrf.mxu3 }
 0x2c3   : > { %v1122_v25 = vmul.f32 %v1114_v39, %v1106_v38  ;;  %v1748_v35 = vadd.f32 %v1732_v13, %v1024_v41 }
 0x2c4   : > { %v1487_v27 = vpop.eup %1486  ;;  %v1076_v36 = vadd.f32 2.0, %v1068_v40  ;;  %v1116_v0 = vmul.f32 %v1068_v40, %v1020_v15 }
 0x2c5   : > { %1131 = vst.msk [vmem:[%s1745_s26] sm:$0xff] %vm1130_vm1, %v1122_v25  ;;  %v1091_v29 = vmul.f32 %v1487_v27, %v1075_v26  ;;  %v1038_v7 = vmin.f32 %v1748_v35, 20.0 }
 0x2c6   : > { %1490 = vrcp.f32 %v1076_v36 }
 0x2c7   : > { %v1489_v37 = vpop.eup %1488  ;;  %v1099_v42 = vsub.f32 2.0, %v1091_v29  ;;  %v1050_v43 = vmul.f32 1.442695, %v1038_v7 }
 0x2c8   : > { %v1061_v44 = vadd.f32 2.0, %v1489_v37 }
 0x2c9   : > { %v1107_v45 = vmul.f32 %v1487_v27, %v1099_v42  ;;  %1492 = vpow2.f32 %v1050_v43 }
 0x2ca   : > { %v1069_v48 = vmul.f32 %v1489_v37, %v1061_v44  ;;  %v1026_v49 = vpop.f32.mrf.mxu3 }
 0x2cb   : > { %v1123_v50 = vmul.f32 %v1115_v46, %v1107_v45  ;;  %v1027_v51 = vadd.f32 %v1732_v13, %v1026_v49 }
 0x2cc   : > { %v1491_v52 = vpop.eup %1490  ;;  %v1077_v53 = vadd.f32 2.0, %v1069_v48  ;;  %v1117_v11 = vmul.f32 %v1069_v48, %v1738_v23 }
 0x2cd   : > { %1132 = vst.msk [vmem:[%s1745_s26 + $0x8] sm:$0xff] %vm1130_vm1, %v1123_v50  ;;  %v1092_v54 = vmul.f32 %v1491_v52, %v1076_v36  ;;  %v1039_v55 = vmin.f32 %v1027_v51, 20.0 }
 0x2ce   : > { %1494 = vrcp.f32 %v1077_v53 }
 0x2cf   : > { %v1493_v56 = vpop.eup %1492  ;;  %v1100_v57 = vsub.f32 2.0, %v1092_v54  ;;  %v1052_v58 = vmul.f32 1.442695, %v1039_v55 }
 0x2d0   : > { %v1062_v60 = vadd.f32 2.0, %v1493_v56 }
 0x2d1   : > { %v1108_v62 = vmul.f32 %v1491_v52, %v1100_v57  ;;  %1496 = vpow2.f32 %v1052_v58 }
 0x2d2   : > { %v1070_v1 = vmul.f32 %v1493_v56, %v1062_v60  ;;  %v1029_v10 = vpop.f32.mrf.mxu3 }
 0x2d3   : > { %v1124_v59 = vmul.f32 %v1116_v0, %v1108_v62  ;;  %v1030_v2 = vadd.f32 %v1732_v13, %v1029_v10 }
 0x2d4   : > { %v1495_v61 = vpop.eup %1494  ;;  %v1078_v3 = vadd.f32 2.0, %v1070_v1  ;;  %v1118_v23 = vmul.f32 %v1070_v1, %v1748_v35 }
 0x2d5   : > { %1133 = vst.msk [vmem:[%s1745_s26 + $0x10] sm:$0xff] %vm1130_vm1, %v1124_v59  ;;  %v1093_v47 = vmul.f32 %v1495_v61, %v1077_v53  ;;  %v1040_v63 = vmin.f32 %v1030_v2, 20.0 }
 0x2d6   : > { %1498 = vrcp.f32 %v1078_v3 }
 0x2d7   : > { %v1497_v4 = vpop.eup %1496  ;;  %v1101_v5 = vsub.f32 2.0, %v1093_v47  ;;  %v1054_v6 = vmul.f32 1.442695, %v1040_v63 }
 0x2d8   : > { %v1063_v8 = vadd.f32 2.0, %v1497_v4 }
 0x2d9   : > { %v1109_v9 = vmul.f32 %v1495_v61, %v1101_v5  ;;  %1500 = vpow2.f32 %v1054_v6 }
 0x2da   : > { %v1071_v12 = vmul.f32 %v1497_v4, %v1063_v8  ;;  %v1031_v14 = vpop.f32.mrf.mxu3 }
 0x2db   : > { %v1125_v15 = vmul.f32 %v1117_v11, %v1109_v9  ;;  %v1032_v16 = vadd.f32 %v1732_v13, %v1031_v14 }
 0x2dc   : > { %v1499_v17 = vpop.eup %1498  ;;  %v1079_v18 = vadd.f32 2.0, %v1071_v12  ;;  %v1119_v41 = vmul.f32 %v1071_v12, %v1027_v51 }
 0x2dd   : > { %1134 = vst.msk [vmem:[%s1745_s26 + $0x18] sm:$0xff] %vm1130_vm1, %v1125_v15  ;;  %v1094_v19 = vmul.f32 %v1499_v17, %v1078_v3  ;;  %v1041_v20 = vmin.f32 %v1032_v16, 20.0 }
 0x2de   : > { %1502 = vrcp.f32 %v1079_v18 }
 0x2df   : > { %v1501_v21 = vpop.eup %1500  ;;  %v1102_v22 = vsub.f32 2.0, %v1094_v19  ;;  %v1056_v24 = vmul.f32 1.442695, %v1041_v20 }
 0x2e0   : > { %v1064_v26 = vadd.f32 2.0, %v1501_v21 }
 0x2e1   : > { %v1110_v28 = vmul.f32 %v1499_v17, %v1102_v22  ;;  %1504 = vpow2.f32 %v1056_v24 }
 0x2e2   : > { %v1072_v30 = vmul.f32 %v1501_v21, %v1064_v26 }
 0x2e3   : > { %v1126_v31 = vmul.f32 %v1118_v23, %v1110_v28 }
 0x2e4   : > { %v1503_v13 = vpop.eup %1502  ;;  %v1080_v32 = vadd.f32 2.0, %v1072_v30  ;;  %v1120_v42 = vmul.f32 %v1072_v30, %v1030_v2 }
 0x2e5   : > { %1135 = vst.msk [vmem:[%s1745_s26 + $0x20] sm:$0xff] %vm1130_vm1, %v1126_v31  ;;  %v1095_v33 = vmul.f32 %v1503_v13, %v1079_v18 }
 0x2e6   : > { %1506 = vrcp.f32 %v1080_v32 }
 0x2e7   : > { %v1505_v34 = vpop.eup %1504  ;;  %v1103_v38 = vsub.f32 2.0, %v1095_v33 }
 0x2e8   : > { %v1065_v39 = vadd.f32 2.0, %v1505_v34 }
 0x2e9   : > { %v1111_v40 = vmul.f32 %v1503_v13, %v1103_v38 }
 0x2ea   : > { %v1073_v25 = vmul.f32 %v1505_v34, %v1065_v39 }
 0x2eb   : > { %v1127_v27 = vmul.f32 %v1119_v41, %v1111_v40 }
 0x2ec   : > { %v1507_v36 = vpop.eup %1506  ;;  %v1081_v35 = vadd.f32 2.0, %v1073_v25  ;;  %v1121_v49 = vmul.f32 %v1073_v25, %v1032_v16 }
 0x2ed   : > { %1136 = vst.msk [vmem:[%s1745_s26 + $0x28] sm:$0xff] %vm1130_vm1, %v1127_v27  ;;  %v1096_v29 = vmul.f32 %v1507_v36, %v1080_v32 }
 0x2ee   : > { %1508 = vrcp.f32 %v1081_v35 }
 0x2ef   : > { %v1104_v7 = vsub.f32 2.0, %v1096_v29 }
 0x2f1   : > { %v1112_v37 = vmul.f32 %v1507_v36, %v1104_v7 }
 0x2f3   : > { %v1128_v43 = vmul.f32 %v1120_v42, %v1112_v37 }
 0x2f4   : > { %v1509_v44 = vpop.eup %1508 }
 0x2f5   : > { %1137 = vst.msk [vmem:[%s1745_s26 + $0x30] sm:$0xff] %vm1130_vm1, %v1128_v43  ;;  %v1097_v45 = vmul.f32 %v1509_v44, %v1081_v35 }
 0x2f7   : > { %v1105_v46 = vsub.f32 2.0, %v1097_v45 }
 0x2f9   : > { %v1113_v48 = vmul.f32 %v1509_v44, %v1105_v46 }
 0x2fb   : > { %v1129_v50 = vmul.f32 %v1121_v49, %v1113_v48 }
 0x2fd   : > { %1138 = vst.msk [vmem:[%s1745_s26 + $0x38] sm:$0xff] %vm1130_vm1, %v1129_v50 }
 0x2fe PF: > { %s19_s30 = sadd.s32 1, %s1516_s30  }
 0x2ff   : > { %p16_p4 = scmp.ge.s32.totalorder %s19_s30, 4  }
 0x301   :  { %18 = sbr.rel (!%p16_p4) target bundleno = 1 (0x1), region = 86 }

</bundles_post_ra>
